<compile_context>
chip_gen: v5e
topology: v5e:2x2
jax: 0.10.0
libtpu: 0.0.40
codegen_flags: <defaults>
</compile_context>

<pallas_src>
import functools

import jax
import jax.numpy as jnp
from jax.experimental import pallas as pl
from jax.experimental.pallas import tpu as pltpu


def _round_up(v, m):
    return ((v + m - 1) // m) * m


def _round_down(v, m):
    return (v // m) * m


def _vmem_budget():
    try:
        vmem_cap = int(pltpu.get_tpu_info().vmem_capacity_bytes)
    except Exception:  # conservative (v7x-sized) fallback
        vmem_cap = 64 * 1024 * 1024
    vmem_limit = min(int(vmem_cap * 3 // 4), 100 * 1024 * 1024)
    budget = int(vmem_limit * 0.8)  # headroom under the scoped limit
    return vmem_limit, budget


# ---------------------------------------------------------------------------
# Single-pass path: whole batch of one feature tile resident in VMEM.
# ---------------------------------------------------------------------------
def _bn_single_pass_kernel(x_ref, gamma_ref, beta_ref, o_ref, *, eps, n):
    x = x_ref[...].astype(jnp.float32)                       # (N, TILE_F)
    # Batch (sublane) reductions on the VPU; compute is filler at the HBM
    # roofline, so no MXU ones-row trick (avoids the v5e f32-matmul penalty).
    mean = jnp.sum(x, axis=0, keepdims=True) * (1.0 / n)     # (1, TILE_F)
    diff = x - mean
    ssq = jnp.sum(diff * diff, axis=0, keepdims=True)
    # torch.var default is unbiased (N-1); guard N==1 (PyTorch would give NaN).
    var = ssq * (1.0 / max(n - 1, 1))
    inv_std = jax.lax.rsqrt(var + eps)
    # Fold normalization into a per-feature affine: one mul + one add / elem.
    scale = gamma_ref[...].astype(jnp.float32) * inv_std
    shift = beta_ref[...].astype(jnp.float32) - mean * scale
    o_ref[...] = (x * scale + shift).astype(o_ref.dtype)


def _bn_single_pass(x, gamma, beta, eps, tile_f, vmem_limit):
    n, f = x.shape
    kernel = functools.partial(_bn_single_pass_kernel, eps=float(eps), n=n)
    return pl.pallas_call(
        kernel,
        out_shape=jax.ShapeDtypeStruct((n, f), x.dtype),
        grid_spec=pltpu.PrefetchScalarGridSpec(
            num_scalar_prefetch=0,
            grid=(pl.cdiv(f, tile_f),),
            in_specs=[
                pl.BlockSpec((n, tile_f), lambda j: (0, j)),   # x tile
                pl.BlockSpec((1, tile_f), lambda j: (0, j)),   # gamma tile
                pl.BlockSpec((1, tile_f), lambda j: (0, j)),   # beta tile
            ],
            out_specs=pl.BlockSpec((n, tile_f), lambda j: (0, j)),
        ),
        compiler_params=pltpu.CompilerParams(
            dimension_semantics=("parallel",),
            vmem_limit_bytes=vmem_limit,
        ),
    )(x, gamma.reshape(1, f), beta.reshape(1, f))


# ---------------------------------------------------------------------------
# Large-N fallback: stats kernel (batch-tiled reduction) + normalize kernel.
# ---------------------------------------------------------------------------
def _bn_stats_kernel(x_ref, gamma_ref, beta_ref, scale_ref, shift_ref,
                     k_ref, sum_ref, ssq_ref, *, eps, n, tile_n):
    bi = pl.program_id(1)                       # batch-tile (reduction) axis
    x = x_ref[...].astype(jnp.float32)          # (TILE_N, TILE_F)
    # Mask rows past N (partial last batch block reads unspecified data and a
    # batch reduction would otherwise be corrupted by it).
    row = jax.lax.broadcasted_iota(jnp.int32, x.shape, 0) + bi * tile_n
    valid = row < n

    @pl.when(bi == 0)
    def _():
        # Shift constant K = column means of the first tile; accumulating
        # sum/sumsq of (x - K) avoids catastrophic cancellation of
        # E[x^2] - E[x]^2 when |mean| >> std.
        x0 = jnp.where(valid, x, 0.0)
        k_ref[...] = jnp.sum(x0, axis=0, keepdims=True) * (1.0 / min(n, tile_n))
        sum_ref[...] = jnp.zeros_like(sum_ref)
        ssq_ref[...] = jnp.zeros_like(ssq_ref)

    d = jnp.where(valid, x - k_ref[...], 0.0)
    sum_ref[...] += jnp.sum(d, axis=0, keepdims=True)
    ssq_ref[...] += jnp.sum(d * d, axis=0, keepdims=True)

    @pl.when(bi == pl.num_programs(1) - 1)
    def _():
        s = sum_ref[...]
        mean = k_ref[...] + s * (1.0 / n)
        var = (ssq_ref[...] - s * s * (1.0 / n)) * (1.0 / max(n - 1, 1))
        inv_std = jax.lax.rsqrt(var + eps)
        scale = gamma_ref[...].astype(jnp.float32) * inv_std
        scale_ref[...] = scale
        shift_ref[...] = beta_ref[...].astype(jnp.float32) - mean * scale


def _bn_normalize_kernel(x_ref, scale_ref, shift_ref, o_ref):
    o_ref[...] = (x_ref[...].astype(jnp.float32) * scale_ref[...]
                  + shift_ref[...]).astype(o_ref.dtype)


def _bn_two_pass(x, gamma, beta, eps, tile_n, tile_f, vmem_limit):
    n, f = x.shape
    f_tiles = pl.cdiv(f, tile_f)
    n_tiles = pl.cdiv(n, tile_n)
    gamma2d = gamma.reshape(1, f)
    beta2d = beta.reshape(1, f)

    stats_kernel = functools.partial(
        _bn_stats_kernel, eps=float(eps), n=n, tile_n=tile_n)
    scale, shift = pl.pallas_call(
        stats_kernel,
        out_shape=(jax.ShapeDtypeStruct((1, f), jnp.float32),
                   jax.ShapeDtypeStruct((1, f), jnp.float32)),
        grid_spec=pltpu.PrefetchScalarGridSpec(
            num_scalar_prefetch=0,
            grid=(f_tiles, n_tiles),
            in_specs=[
                pl.BlockSpec((tile_n, tile_f), lambda j, i: (i, j)),
                pl.BlockSpec((1, tile_f), lambda j, i: (0, j)),
                pl.BlockSpec((1, tile_f), lambda j, i: (0, j)),
            ],
            out_specs=[pl.BlockSpec((1, tile_f), lambda j, i: (0, j)),
                       pl.BlockSpec((1, tile_f), lambda j, i: (0, j))],
            scratch_shapes=[pltpu.VMEM((1, tile_f), jnp.float32)] * 3,
        ),
        compiler_params=pltpu.CompilerParams(
            dimension_semantics=("parallel", "arbitrary"),
            vmem_limit_bytes=vmem_limit,
        ),
    )(x, gamma2d, beta2d)

    out = pl.pallas_call(
        _bn_normalize_kernel,
        out_shape=jax.ShapeDtypeStruct((n, f), x.dtype),
        grid_spec=pltpu.PrefetchScalarGridSpec(
            num_scalar_prefetch=0,
            grid=(f_tiles, n_tiles),
            in_specs=[
                pl.BlockSpec((tile_n, tile_f), lambda j, i: (i, j)),
                pl.BlockSpec((1, tile_f), lambda j, i: (0, j)),
                pl.BlockSpec((1, tile_f), lambda j, i: (0, j)),
            ],
            out_specs=pl.BlockSpec((tile_n, tile_f), lambda j, i: (i, j)),
        ),
        compiler_params=pltpu.CompilerParams(
            dimension_semantics=("parallel", "parallel"),
            vmem_limit_bytes=vmem_limit,
        ),
    )(x, scale, shift)
    return out


# ---------------------------------------------------------------------------
# Public wrapper: pick path + tile sizes from the VMEM budget.
# ---------------------------------------------------------------------------
def batchnorm_dense(x, gamma, beta, eps=1e-8):
    """BatchNormDense forward. x: (N, F); gamma, beta: (F,). Returns (N, F)."""
    n, f = x.shape
    vmem_limit, budget = _vmem_budget()
    item = jnp.dtype(x.dtype).itemsize

    # Single-pass per-lane cost: double-buffered input + output blocks plus
    # ~3 live (N, TILE_F) f32 temporaries (f32 copy, diff, squared/normalized).
    per_lane = n * (2 * item + 2 * item + 3 * 4) + 64
    tile_f = _round_down(budget // per_lane, 128)
    f_ceil = _round_up(f, 128)

    if tile_f >= 128:
        tile_f = min(tile_f, f_ceil)
        # Guarantee >= 2 grid steps when F allows it, so megacore sharding
        # engages both TensorCores on v7x; the extra step (~0.35 us) is noise
        # on single-TC v5e/v6e.
        if f_ceil >= 256:
            tile_f = min(tile_f, max(128, _round_down(f_ceil // 2, 128)))
        return _bn_single_pass(x, gamma, beta, eps, tile_f, vmem_limit)

    # Large-N fallback: even an (N, 128) resident block would blow VMEM.
    tile_f = min(512, f_ceil)
    per_elem = 2 * item + 2 * item + 3 * 4 + 1
    tile_n = _round_down(budget // (tile_f * per_elem), 8)
    tile_n = max(8, min(tile_n, _round_up(n, 8)))
    return _bn_two_pass(x, gamma, beta, eps, tile_n, tile_f, vmem_limit)


def batchnorm_dense_ref(x, gamma, beta, eps=1e-8):
    mean = jnp.mean(x, axis=0)
    var = jnp.var(x, axis=0, ddof=1)  # unbiased, like torch.var default
    return gamma * (x - mean) / jnp.sqrt(var + eps) + beta


if __name__ == "__main__":
    # Small dense input consistent with the module: batch=8, num_features=32.
    key = jax.random.PRNGKey(0)
    N, F = 8, 32
    x = jax.random.normal(key, (N, F), dtype=jnp.float32)
    gamma = jnp.ones((F,), dtype=jnp.float32)   # reset_parameters(): ones
    beta = jnp.zeros((F,), dtype=jnp.float32)   # reset_parameters(): zeros

    out = jax.block_until_ready(batchnorm_dense(x, gamma, beta, eps=1e-8))
    ref = batchnorm_dense_ref(x, gamma, beta, eps=1e-8)
    assert out.shape == (N, F)
    assert jnp.allclose(out, ref, atol=1e-5, rtol=1e-5), "single-pass mismatch"

    # Exercise the large-N fallback path at small shapes by forcing small
    # tiles (ragged batch and feature extents -> partial blocks + masking).
    N2, F2 = 20, 160
    x2 = jax.random.normal(jax.random.PRNGKey(1), (N2, F2), jnp.float32) * 0.5 + 3.0
    g2 = jax.random.normal(jax.random.PRNGKey(2), (F2,), jnp.float32)
    b2 = jax.random.normal(jax.random.PRNGKey(3), (F2,), jnp.float32)
    vmem_limit, _ = _vmem_budget()
    out2 = jax.block_until_ready(
        _bn_two_pass(x2, g2, b2, 1e-8, tile_n=8, tile_f=128,
                     vmem_limit=vmem_limit))
    ref2 = batchnorm_dense_ref(x2, g2, b2, 1e-8)
    assert jnp.allclose(out2, ref2, atol=1e-5, rtol=1e-5), "two-pass mismatch"

    print("KERNEL_OK")
</pallas_src>

<mosaic_0001>
module attributes {stable_mosaic.version = 11 : i64} {
  func.func @_bn_single_pass_kernel(%arg0: i32, %arg1: memref<8x128xf32, #tpu.memory_space<vmem>>, %arg2: memref<1x128xf32, #tpu.memory_space<vmem>>, %arg3: memref<1x128xf32, #tpu.memory_space<vmem>>, %arg4: memref<8x128xf32, #tpu.memory_space<vmem>>) attributes {dimension_semantics = [#tpu.dimension_semantics<parallel>], iteration_bounds = array<i64: 1>, scalar_prefetch = 0 : i64, scratch_operands = 0 : i64, tpu.core_type = #tpu.core_type<tc>, window_params = [{transform_indices = @transform_0, window_bounds = array<i64: 8, 128>}, {transform_indices = @transform_1, window_bounds = array<i64: 1, 128>}, {transform_indices = @transform_2, window_bounds = array<i64: 1, 128>}, {transform_indices = @transform_3, window_bounds = array<i64: 8, 128>}]} {
    %c0 = arith.constant 0 : index
    %c0_0 = arith.constant 0 : index
    %0 = vector.load %arg1[%c0, %c0_0] : memref<8x128xf32, #tpu.memory_space<vmem>>, vector<8x128xf32>
    %cst = arith.constant dense<0.000000e+00> : vector<128xf32>
    %1 = vector.multi_reduction <add>, %0, %cst [0] : vector<8x128xf32> to vector<128xf32>
    %2 = vector.shape_cast %1 : vector<128xf32> to vector<1x128xf32>
    %cst_1 = arith.constant 1.250000e-01 : f32
    %3 = vector.broadcast %cst_1 : f32 to vector<1x128xf32>
    %4 = arith.mulf %2, %3 : vector<1x128xf32>
    %5 = vector.broadcast %4 : vector<1x128xf32> to vector<8x128xf32>
    %6 = arith.subf %0, %5 : vector<8x128xf32>
    %7 = arith.mulf %6, %6 : vector<8x128xf32>
    %cst_2 = arith.constant dense<0.000000e+00> : vector<128xf32>
    %8 = vector.multi_reduction <add>, %7, %cst_2 [0] : vector<8x128xf32> to vector<128xf32>
    %9 = vector.shape_cast %8 : vector<128xf32> to vector<1x128xf32>
    %cst_3 = arith.constant 0.142857149 : f32
    %10 = vector.broadcast %cst_3 : f32 to vector<1x128xf32>
    %11 = arith.mulf %9, %10 : vector<1x128xf32>
    %cst_4 = arith.constant 9.99999993E-9 : f32
    %12 = vector.broadcast %cst_4 : f32 to vector<1x128xf32>
    %13 = arith.addf %11, %12 : vector<1x128xf32>
    %14 = math.rsqrt %13 : vector<1x128xf32>
    %c0_5 = arith.constant 0 : index
    %c0_6 = arith.constant 0 : index
    %15 = vector.load %arg2[%c0_5, %c0_6] : memref<1x128xf32, #tpu.memory_space<vmem>>, vector<1x128xf32>
    %16 = arith.mulf %15, %14 : vector<1x128xf32>
    %c0_7 = arith.constant 0 : index
    %c0_8 = arith.constant 0 : index
    %17 = vector.load %arg3[%c0_7, %c0_8] : memref<1x128xf32, #tpu.memory_space<vmem>>, vector<1x128xf32>
    %18 = arith.mulf %4, %16 : vector<1x128xf32>
    %19 = arith.subf %17, %18 : vector<1x128xf32>
    %20 = vector.broadcast %16 : vector<1x128xf32> to vector<8x128xf32>
    %21 = arith.mulf %0, %20 : vector<8x128xf32>
    %22 = vector.broadcast %19 : vector<1x128xf32> to vector<8x128xf32>
    %23 = arith.addf %21, %22 : vector<8x128xf32>
    %c0_9 = arith.constant 0 : index
    %c0_10 = arith.constant 0 : index
    %24 = vector.load %arg4[%c0_9, %c0_10] : memref<8x128xf32, #tpu.memory_space<vmem>>, vector<8x128xf32>
    tpu.vector_store %arg4[%c0_9, %c0_10], %23 {strides = array<i32>} : memref<8x128xf32, #tpu.memory_space<vmem>>, vector<8x128xf32>,
    return
  }
  func.func @transform_0(%arg0: i32) -> (i32, i32) {
    %c0_i32 = arith.constant 0 : i32
    %c0_i32_0 = arith.constant 0 : i32
    return %c0_i32, %arg0 : i32, i32
  }
  func.func @transform_1(%arg0: i32) -> (i32, i32) {
    %c0_i32 = arith.constant 0 : i32
    %c0_i32_0 = arith.constant 0 : i32
    return %c0_i32, %arg0 : i32, i32
  }
  func.func @transform_2(%arg0: i32) -> (i32, i32) {
    %c0_i32 = arith.constant 0 : i32
    %c0_i32_0 = arith.constant 0 : i32
    return %c0_i32, %arg0 : i32, i32
  }
  func.func @transform_3(%arg0: i32) -> (i32, i32) {
    %c0_i32 = arith.constant 0 : i32
    %c0_i32_0 = arith.constant 0 : i32
    return %c0_i32, %arg0 : i32, i32
  }
}

</mosaic_0001>

<bundles_post_ra>
// kernel: tpu_custom_call.1
= control target key start
LH: loop header
LB: loop body
LE: loop exit
PB: predicated region body
PF: predicated region fallthrough
CT: control target
= control target key end

     0   :  { %8 = vsyncpa [#allocation3], 0  ;;  %s221_s0 = inlined_call_operand.hbm [shape: f32[8,32], index: 0, kind: input, shape index: {}]   ;;  %s222_s1 = inlined_call_operand.hbm [shape: f32[1,32], index: 1, kind: input, shape index: {}]   ;;  %s223_s2 = inlined_call_operand.vmem [shape: f32[1,32], index: 2, kind: input, shape index: {}]   ;;  %s224_s3 = inlined_call_operand.hbm [shape: f32[8,32], index: 3, kind: output, shape index: {}]  }
   0x1   :  { %9 = vsyncpa [#allocation6], 0 }
   0x2   :  { %10 = vsyncpa [#allocation4], 0  ;;  %s16_s14 = sshll.u32 %s221_s0, 4  ;;  %s186_s15 = smov [#allocation2]   ;;  %s17_s14 = int_to_ptr.hbm [resolvable:$true] %s16_s14 }
   0x3   :  { %s18_s16 = sshll.u32 %s186_s15, 4  ;;  %s27_s19 = sshll.u32 %s222_s1, 4  ;;  %s19_s16 = int_to_ptr.vmem [resolvable:$true] %s18_s16  ;;  %s28_s19 = int_to_ptr.hbm [resolvable:$true] %s27_s19 }
   0x4   :  { %21 = dma.hbm_to_vmem [thread:$0]  %s17_s14, 128, %s19_s16, [#allocation3]  }
   0x5   :  { %s187_s20 = smov [#allocation5]  }
   0x6   :  { %s29_s21 = sshll.u32 %s187_s20, 4  ;;  %s30_s21 = int_to_ptr.vmem [resolvable:$true] %s29_s21 }
   0x7   :  { %32 = dma.hbm_to_vmem [thread:$0]  %s28_s19, 16, %s30_s21, [#allocation6]  }
   0x8   :  { %180 = dma.done.wait [#allocation3], 128  }
   0x9   :  { %181 = vsyncadd [#allocation3], 4294967168 }
   0xa   :  { %182 = dma.done.wait [#allocation6], 16  }
   0xb   :  { %183 = vsyncadd [#allocation6], 4294967280  ;;  %v43_v0 = vld [vmem:[#allocation2] sm:$0xff]  ;;  %v71_v24 = vld [vmem:[#allocation5] sm:$0x1]  ;;  %s188_s22 = smov [#allocation7]  }
   0xc   :  { %v44_v1 = vrot.slane %v43_v0, 4  ;;  %v73_v27 = vld [vmem:[%s223_s2] sm:$0x1]  ;;  %s90_s23 = sshll.u32 %s188_s22, 4  ;;  %s92_s26 = sshll.u32 %s224_s3, 4  ;;  %s91_s23 = int_to_ptr.vmem [resolvable:$true] %s90_s23  ;;  %s93_s26 = int_to_ptr.hbm [resolvable:$true] %s92_s26 }
   0xe   :  { %v45_v2 = vadd.f32 %v44_v1, %v43_v0 }
  0x10   :  { %v46_v3 = vrot.slane %v45_v2, 2 }
  0x12   :  { %v47_v4 = vadd.f32 %v46_v3, %v45_v2 }
  0x14   :  { %v48_v5 = vrot.slane %v47_v4, 1 }
  0x16   :  { %v49_v6 = vadd.f32 %v48_v5, %v47_v4 }
  0x18   :  { %v50_v7 = vmul.f32 0.125, %v49_v6 }
  0x1a   :  { %v51_v8 = vsub.f32 %v43_v0, %v50_v7 }
  0x1c   :  { %v52_v9 = vmul.f32 %v51_v8, %v51_v8 }
  0x1e   :  { %v53_v10 = vrot.slane %v52_v9, 4 }
  0x20   :  { %v54_v11 = vadd.f32 %v53_v10, %v52_v9 }
  0x22   :  { %v55_v12 = vrot.slane %v54_v11, 2 }
  0x24   :  { %v56_v13 = vadd.f32 %v55_v12, %v54_v11 }
  0x26   :  { %v57_v14 = vrot.slane %v56_v13, 1 }
  0x28   :  { %v58_v15 = vadd.f32 %v57_v14, %v56_v13 }
  0x2a   :  { %v59_v16 = vmul.f32 0.14285715, %v58_v15 }
  0x2c   :  { %v60_v17 = vadd.f32 1e-08, %v59_v16 }
  0x2e   :  { %106 = vrsqrt.f32 %v60_v17  ;;  %vm67_vm0 = vweird.f32 %v60_v17 }
  0x34   :  { %v107_v18 = vpop.eup %106 }
  0x35   :  { %v62_v19 = vmul.f32 %v107_v18, %v60_v17  ;;  %vm68_vm1 = vweird.f32 %v107_v18 }
  0x36   :  { %vm69_vm2 = vmor %vm67_vm0, %vm68_vm1 }
  0x37   :  { %v63_v20 = vmul.f32 %v107_v18, %v62_v19 }
  0x39   :  { %v64_v21 = vmul.f32 0.5, %v63_v20 }
  0x3b   :  { %v65_v22 = vsub.f32 1.5, %v64_v21 }
  0x3d   :  { %v66_v23 = vmul.f32 %v107_v18, %v65_v22 }
  0x3f   :  { %v70_v25 = vsel %vm69_vm2, %v107_v18, %v66_v23 }
  0x40   :  { %v72_v26 = vmul.f32 %v71_v24, %v70_v25 }
  0x42   :  { %v74_v28 = vmul.f32 %v72_v26, %v50_v7  ;;  %v77_v29 = vperm.slane %v72_v26, 0 }
  0x44   :  { %v75_v30 = vsub.f32 %v73_v27, %v74_v28  ;;  %v79_v31 = vmul.f32 %v77_v29, %v43_v0 }
  0x46   :  { %v81_v32 = vperm.slane %v75_v30, 0 }
  0x48   :  { %v83_v33 = vadd.f32 %v81_v32, %v79_v31 }
  0x4a   :  { %84 = vst [vmem:[#allocation7] sm:$0xff] %v83_v33 }
  0x4b   :  { %95 = dma.vmem_to_hbm [thread:$0]  %s91_s23, 128, %s93_s26, [#allocation4]  }
  0x4c   :  { %184 = dma.done.wait [#allocation4], 128  }
  0x4d   :  { %185 = vsyncadd [#allocation4], 4294967168 }
  0x4e   :  { %100 = vsyncpa [#allocation3], 1 }
  0x4f   :  { %101 = vsyncpa [#allocation6], 1 }
  0x50   :  { %102 = vsyncpa [#allocation4], 1 }

</bundles_post_ra>
